<compile_context>
chip_gen: v6e
topology: v6e:2x2x1
jax: 0.10.0
libtpu: 0.0.40
codegen_flags: <defaults>
</compile_context>

<pallas_src>
import jax
import jax.numpy as jnp
from jax import lax
from jax.experimental import pallas as pl
from jax.experimental.pallas import tpu as pltpu


def _round_up(x, m):
    return (x + m - 1) // m * m


def _identity_min(dtype):
    dtype = jnp.dtype(dtype)
    if jnp.issubdtype(dtype, jnp.floating):
        return float("-inf")
    return int(jnp.iinfo(dtype).min)


def _sublane_multiple(dtype):
    # f32 -> 8, bf16 -> 16, int8/fp8 -> 32
    return max(8, 32 // jnp.dtype(dtype).itemsize)


def _make_kernel(neg):
    """Grid = (feature tile fi, node tile t) — t is the reduction axis.

    g_lo_ref/g_hi_ref : SMEM [n_tiles] int32  (scalar prefetch) graph-id range per tile
    batch_ref         : VMEM [TN, 1]  int32   node -> graph id for this tile
    x_ref             : VMEM [TN, TF]         node-feature tile
    out_ref           : VMEM [B_pad, TF]      all-graphs running max (resident over t)
    """

    def kernel(g_lo_ref, g_hi_ref, batch_ref, x_ref, out_ref):
        t = pl.program_id(1)

        @pl.when(t == 0)
        def _init():
            out_ref[...] = jnp.full(out_ref.shape, neg, out_ref.dtype)

        g_lo = g_lo_ref[t]
        g_hi = g_hi_ref[t]
        bt = batch_ref[...]                                        # [TN, 1]
        row_ids = lax.broadcasted_iota(jnp.int32, (out_ref.shape[0], 1), 0)

        def body(g, carry):
            # x_ref[...] is (re)loaded inside the loop body so the big tile is
            # never live across iterations (VMEM reload, no vreg spill).
            masked = jnp.where(bt == g, x_ref[...], neg)           # [TN, TF] VPU select
            tile_max = jnp.max(masked, axis=0, keepdims=True)      # [1, TF]  sublane reduce
            cur = out_ref[...]
            out_ref[...] = jnp.where(row_ids == g,
                                     jnp.maximum(cur, tile_max), cur)
            return carry

        lax.fori_loop(g_lo, g_hi + 1, body, 0)

    return kernel


def global_max_pool(x, batch, num_graphs, *, node_tile=512, feat_tile=512,
                    interpret=False):
    """Pallas TPU implementation of torch_geometric's global_max_pool.

    Graphs with zero nodes return -inf (identity of max), matching
    jax.ops.segment_max; PyG batches normally contain no empty graphs.
    """
    x = jnp.asarray(x)
    batch = jnp.asarray(batch, jnp.int32)
    n, f = x.shape
    dtype = x.dtype
    neg = _identity_min(dtype)
    sub = _sublane_multiple(dtype)

    # ---- feature (lane) tiling: lane-dense, padded to a multiple of tf.
    f_pad = _round_up(max(f, 128), 128)
    tf = min(_round_up(feat_tile, 128), f_pad)
    f_pad = _round_up(f_pad, tf)
    f_tiles = f_pad // tf

    # ---- node (sublane) tiling: dtype-aligned sublane tiles.
    tn = min(_round_up(node_tile, sub), _round_up(max(n, 1), sub))
    n_pad = _round_up(max(n, 1), tn)
    n_tiles = n_pad // tn

    # ---- accumulator rows (graphs), padded for dense aligned stores.
    b_pad = _round_up(max(num_graphs, 1), sub)

    # Padding rows of x are -inf so their batch id is irrelevant for the max.
    x_pad = jnp.full((n_pad, f_pad), neg, dtype).at[:n, :f].set(x)
    fill_id = batch[n - 1] if n > 0 else jnp.int32(0)   # keeps tile ranges tight
    batch_full = jnp.full((n_pad,), fill_id, jnp.int32).at[:n].set(batch)
    batch_col = batch_full.reshape(n_pad, 1)

    # Per-node-tile graph-id range, computed on device (jit friendly). Using
    # min/max (not first/last) keeps this correct even for unsorted batches.
    per_tile = batch_full.reshape(n_tiles, tn)
    g_lo = jnp.min(per_tile, axis=1).astype(jnp.int32)
    g_hi = jnp.max(per_tile, axis=1).astype(jnp.int32)

    grid_spec = pltpu.PrefetchScalarGridSpec(
        num_scalar_prefetch=2,
        grid=(f_tiles, n_tiles),
        in_specs=[
            pl.BlockSpec((tn, 1), lambda fi, t, glo, ghi: (t, 0)),   # batch ids
            pl.BlockSpec((tn, tf), lambda fi, t, glo, ghi: (t, fi)),  # features
        ],
        out_specs=pl.BlockSpec((b_pad, tf), lambda fi, t, glo, ghi: (0, fi)),
    )

    out = pl.pallas_call(
        _make_kernel(neg),
        grid_spec=grid_spec,
        out_shape=jax.ShapeDtypeStruct((b_pad, f_pad), dtype),
        compiler_params=pltpu.CompilerParams(
            dimension_semantics=("parallel", "arbitrary"),
        ),
        interpret=interpret,
    )(g_lo, g_hi, batch_col, x_pad)

    return out[:num_graphs, :f]


if __name__ == "__main__":
    key = jax.random.PRNGKey(0)
    k1, k2 = jax.random.split(key)

    # --- Test 1: small shapes consistent with the module's forward -----------
    num_graphs = 2
    nodes_per_graph = 8
    hidden = 32
    n = num_graphs * nodes_per_graph
    x = jax.random.normal(k1, (n, hidden), jnp.float32)
    batch = jnp.repeat(jnp.arange(num_graphs, dtype=jnp.int32), nodes_per_graph)

    out = jax.block_until_ready(global_max_pool(x, batch, num_graphs))
    ref = jax.ops.segment_max(x, batch, num_segments=num_graphs)
    assert out.shape == (num_graphs, hidden)
    assert bool(jnp.array_equal(out, ref))

    # jit-compatibility (no host sync, no data-dependent grid).
    pool_jit = jax.jit(global_max_pool, static_argnums=(2,))
    out_j = jax.block_until_ready(pool_jit(x, batch, num_graphs))
    assert bool(jnp.array_equal(out_j, ref))

    # --- Test 2: ragged graphs spanning several node tiles -------------------
    sizes = jnp.array([50, 3, 120, 60, 67], jnp.int32)   # 5 graphs, 300 nodes
    n2, f2, g2 = 300, 96, 5
    x2 = jax.random.normal(k2, (n2, f2), jnp.float32)
    batch2 = jnp.repeat(jnp.arange(g2, dtype=jnp.int32), sizes,
                        total_repeat_length=n2)
    out2 = jax.block_until_ready(global_max_pool(x2, batch2, g2, node_tile=64))
    ref2 = jax.ops.segment_max(x2, batch2, num_segments=g2)
    assert bool(jnp.array_equal(out2, ref2))

    # --- Test 3: native bf16 (half the HBM bytes on the read path) -----------
    x3 = x.astype(jnp.bfloat16)
    out3 = jax.block_until_ready(global_max_pool(x3, batch, num_graphs))
    ref3 = jax.ops.segment_max(x3, batch, num_segments=num_graphs)
    assert out3.dtype == jnp.bfloat16
    assert bool(jnp.array_equal(out3.astype(jnp.float32),
                                ref3.astype(jnp.float32)))

    print("KERNEL_OK")
</pallas_src>

<mosaic_0001>
module attributes {stable_mosaic.version = 11 : i64} {
  func.func @kernel(%arg0: i32, %arg1: i32, %arg2: memref<1xi32, #tpu.memory_space<smem>>, %arg3: memref<1xi32, #tpu.memory_space<smem>>, %arg4: memref<16x1xi32, #tpu.memory_space<vmem>>, %arg5: memref<16x128xf32, #tpu.memory_space<vmem>>, %arg6: memref<8x128xf32, #tpu.memory_space<vmem>>) attributes {dimension_semantics = [#tpu.dimension_semantics<parallel>, #tpu.dimension_semantics<arbitrary>], iteration_bounds = array<i64: 1, 1>, scalar_prefetch = 2 : i64, scratch_operands = 0 : i64, tpu.core_type = #tpu.core_type<tc>, window_params = [{transform_indices = @transform_0, window_bounds = array<i64: 16, 1>}, {transform_indices = @transform_1, window_bounds = array<i64: 16, 128>}, {transform_indices = @transform_2, window_bounds = array<i64: 8, 128>}]} {
    %c0_i32 = arith.constant 0 : i32
    %0 = arith.cmpi eq, %arg1, %c0_i32 : i32
    %1 = arith.extui %0 : i1 to i32
    %c0_i32_0 = arith.constant 0 : i32
    %2 = arith.cmpi ne, %1, %c0_i32_0 : i32
    scf.if %2 {
      %cst = arith.constant 0xFF800000 : f32
      %12 = vector.broadcast %cst : f32 to vector<8x128xf32>
      %c0_4 = arith.constant 0 : index
      %c0_5 = arith.constant 0 : index
      %13 = vector.load %arg6[%c0_4, %c0_5] : memref<8x128xf32, #tpu.memory_space<vmem>>, vector<8x128xf32>
      tpu.vector_store %arg6[%c0_4, %c0_5], %12 {strides = array<i32>} : memref<8x128xf32, #tpu.memory_space<vmem>>, vector<8x128xf32>,
    } else {
    }
    %3 = arith.index_cast %arg1 : i32 to index
    %4 = memref.load %arg2[%3] : memref<1xi32, #tpu.memory_space<smem>>
    %5 = arith.index_cast %arg1 : i32 to index
    %6 = memref.load %arg3[%5] : memref<1xi32, #tpu.memory_space<smem>>
    %c0 = arith.constant 0 : index
    %c0_1 = arith.constant 0 : index
    %7 = vector.load %arg4[%c0, %c0_1] : memref<16x1xi32, #tpu.memory_space<vmem>>, vector<16x1xi32>
    %8 = tpu.iota {dimensions = array<i32: 0>} : vector<8x1xi32>
    %c1_i32 = arith.constant 1 : i32
    %9 = arith.addi %6, %c1_i32 : i32
    %c0_i32_2 = arith.constant 0 : i32
    %10 = arith.subi %9, %4 : i32
    %11 = arith.addi %4, %10 : i32
    %c1_i32_3 = arith.constant 1 : i32
    scf.for %arg7 = %4 to %11 step %c1_i32_3  : i32 {
      %12 = vector.broadcast %arg7 : i32 to vector<16x1xi32>
      %13 = arith.cmpi eq, %7, %12 : vector<16x1xi32>
      %c0_4 = arith.constant 0 : index
      %c0_5 = arith.constant 0 : index
      %14 = vector.load %arg5[%c0_4, %c0_5] : memref<16x128xf32, #tpu.memory_space<vmem>>, vector<16x128xf32>
      %cst = arith.constant 0xFF800000 : f32
      %15 = vector.shape_cast %13 : vector<16x1xi1> to vector<16x1xi1>
      %16 = vector.broadcast %15 : vector<16x1xi1> to vector<16x128xi1>
      %17 = vector.broadcast %cst : f32 to vector<16x128xf32>
      %18 = arith.select %16, %14, %17 : vector<16x128xi1>, vector<16x128xf32>
      %cst_6 = arith.constant dense<0xFF800000> : vector<128xf32>
      %19 = vector.multi_reduction <maximumf>, %18, %cst_6 [0] : vector<16x128xf32> to vector<128xf32>
      %20 = vector.shape_cast %19 : vector<128xf32> to vector<1x128xf32>
      %c0_7 = arith.constant 0 : index
      %c0_8 = arith.constant 0 : index
      %21 = vector.load %arg6[%c0_7, %c0_8] : memref<8x128xf32, #tpu.memory_space<vmem>>, vector<8x128xf32>
      %22 = vector.broadcast %arg7 : i32 to vector<8x1xi32>
      %23 = arith.cmpi eq, %8, %22 : vector<8x1xi32>
      %24 = vector.broadcast %20 : vector<1x128xf32> to vector<8x128xf32>
      %25 = arith.maximumf %21, %24 : vector<8x128xf32>
      %26 = vector.shape_cast %23 : vector<8x1xi1> to vector<8x1xi1>
      %27 = vector.broadcast %26 : vector<8x1xi1> to vector<8x128xi1>
      %28 = arith.select %27, %25, %21 : vector<8x128xi1>, vector<8x128xf32>
      %c0_9 = arith.constant 0 : index
      %c0_10 = arith.constant 0 : index
      %29 = vector.load %arg6[%c0_9, %c0_10] : memref<8x128xf32, #tpu.memory_space<vmem>>, vector<8x128xf32>
      tpu.vector_store %arg6[%c0_9, %c0_10], %28 {strides = array<i32>} : memref<8x128xf32, #tpu.memory_space<vmem>>, vector<8x128xf32>,
    }
    return
  }
  func.func @transform_0(%arg0: i32, %arg1: i32, %arg2: memref<1xi32, #tpu.memory_space<smem>>, %arg3: memref<1xi32, #tpu.memory_space<smem>>) -> (i32, i32) {
    %c0_i32 = arith.constant 0 : i32
    %c0_i32_0 = arith.constant 0 : i32
    return %arg1, %c0_i32 : i32, i32
  }
  func.func @transform_1(%arg0: i32, %arg1: i32, %arg2: memref<1xi32, #tpu.memory_space<smem>>, %arg3: memref<1xi32, #tpu.memory_space<smem>>) -> (i32, i32) {
    %c0_i32 = arith.constant 0 : i32
    return %arg1, %arg0 : i32, i32
  }
  func.func @transform_2(%arg0: i32, %arg1: i32, %arg2: memref<1xi32, #tpu.memory_space<smem>>, %arg3: memref<1xi32, #tpu.memory_space<smem>>) -> (i32, i32) {
    %c0_i32 = arith.constant 0 : i32
    %c0_i32_0 = arith.constant 0 : i32
    return %c0_i32, %arg0 : i32, i32
  }
}

</mosaic_0001>

<bundles_post_ra>
// kernel: tpu_custom_call.1
= control target key start
LH: loop header
LB: loop body
LE: loop exit
PB: predicated region body
PF: predicated region fallthrough
CT: control target
= control target key end

     0   :  { %11 = vsyncpa [#allocation6], 0  ;;  %v25_v2 = vlaneseq  ;;  %v126_v3 = vmov -inf   ;;  %s195_s0 = inlined_call_operand.<no memory space> [shape: s32[1], index: 0, kind: input, shape index: {}]   ;;  %s196_s1 = inlined_call_operand.<no memory space> [shape: s32[1], index: 1, kind: input, shape index: {}]   ;;  %s197_s2 = inlined_call_operand.vmem [shape: s32[16,1], index: 2, kind: input, shape index: {}]   ;;  %s198_s3 = inlined_call_operand.vmem [shape: f32[16,128], index: 3, kind: input, shape index: {}]   ;;  %s199_s4 = inlined_call_operand.hbm [shape: f32[8,128], index: 4, kind: output, shape index: {}]  }
   0x1   :  { %v23_v0 = vld [vmem:[%s197_s2] sm:$0xff]  ;;  %v24_v1 = vld [vmem:[%s197_s2 + $0x8] sm:$0xff]  ;;  %s27_s21 = sadd.s32 1, %s196_s1  ;;  %20 = vst [vmem:[#allocation5] sm:$0xff] %v126_v3 }
   0x2   :  { %v26_v4 = vshrl.u32 %v25_v2, 7  ;;  %p80_p0 = scmp.ge.s32.totalorder %s195_s0, %s27_s21 }
   0x4   :  { %81 = sbr.rel (%p80_p0) target bundleno = 160 (0xa0), region = 33 }
   0x9 LB: > { %v127_v5 = vmov 0   ;;  %v34_v6 = vstv %s124_s0  ;;  %v37_v10 = vld [vmem:[%s198_s3] sm:$0xff]  ;;  %v38_v11 = vld [vmem:[%s198_s3 + $0x8] sm:$0xff]  ;;  %s31_s0 = sadd.s32 1, %s124_s0   ;;  %s124_s0 = sphi %s195_s0, %s31_s0  }
   0xa   : > { %95 = vset.pattern.permute.xlu0 %v127_v5  ;;  %vm35_vm0 = vcmp.eq.s32.totalorder %v23_v0, %v34_v6  ;;  %vm36_vm1 = vcmp.eq.s32.totalorder %v24_v1, %v34_v6  ;;  %v58_v21 = vld [vmem:[#allocation5] sm:$0xff]  ;;  %vm59_vm4 = vcmp.eq.s32.totalorder %v26_v4, %v34_v6  ;;  %p30_p1 = scmp.ge.s32.totalorder %s31_s0, %s27_s21 }
   0xb   : > { %v39_v7 = vsel %vm35_vm0, 1, %v127_v5  ;;  %v40_v8 = vsel %vm36_vm1, 1, %v127_v5 }
   0xc   : > { %42 = vperm.xlu0 %95, %v39_v7  }
  0x10   : > { %45 = vperm.xlu0 %95, %v40_v8  }
  0x87   : > { %v43_v9 = vpop.permute.xlu0 %42 }
  0x88   : > { %vm47_vm2 = vcmp.eq.s32.totalorder %v43_v9, 1 }
  0x89   : > { %v49_v13 = vsel %vm47_vm2, %v37_v10, -inf }
  0x8b   : > { %v46_v12 = vpop.permute.xlu0 %45 }
  0x8c   : > { %vm48_vm3 = vcmp.eq.s32.totalorder %v46_v12, 1 }
  0x8d   : > { %v50_v14 = vsel %vm48_vm3, %v38_v11, -inf }
  0x8e   : > { %v51_v15 = vmax.f32 %v49_v13, %v50_v14 }
  0x90   : > { %v52_v16 = vrot.slane %v51_v15, 4 }
  0x92   : > { %v53_v17 = vmax.f32 %v51_v15, %v52_v16 }
  0x94   : > { %v54_v18 = vrot.slane %v53_v17, 2 }
  0x96   : > { %v55_v19 = vmax.f32 %v53_v17, %v54_v18 }
  0x98   : > { %v56_v20 = vrot.slane %v55_v19, 1 }
  0x9a   : > { %v57_v22 = vmax.f32 %v55_v19, %v56_v20 }
  0x9b   :  { %33 = sbr.rel (!%p30_p1) target bundleno = 9 (0x9), region = 39 }
  0x9c   : > { %v60_v23 = vmax.f32 %v58_v21, %v57_v22 }
  0x9e   : > { %v63_v24 = vsel %vm59_vm4, %v60_v23, %v58_v21 }
  0x9f   : > { %64 = vst [vmem:[#allocation5] sm:$0xff] %v63_v24 }
  0xa0 PF:  { %s128_s7 = smov [#allocation5]  }
  0xa1   :  { %s71_s8 = sshll.u32 %s128_s7, 4  ;;  %s72_s8 = int_to_ptr.vmem [resolvable:$true] %s71_s8 }
  0xa2   :  { %s96_s9 = scalar_lea.vmem %s72_s8, 128  ;;  %p101_p3 = scmp.lt.s32.totalorder %s72_s8, %s72_s8 }
  0xa3   :  { %p97_p2 = scmp.ne.s32.totalorder %s72_s8, %s96_s9  ;;  %p102_p4 = scmp.lt.s32.totalorder %s96_s9, %s96_s9 }
  0xa5   :  { %p103_p5 = por %p102_p4, %p101_p3 }
  0xa7   :  { %p104_p6 = pnand %p103_p5, %p97_p2 }
  0xa9   :  { %107 = shalt.err (!%p104_p6)
}
  0xaa   :  { %74 = dma.vmem_to_hbm [thread:$0]  %s72_s8, 128, %s199_s4, [#allocation6]  }
  0xab   :  { %120 = dma.done.wait [#allocation6], 128  }
  0xac   :  { %121 = vsyncadd [#allocation6], 4294967168 }
  0xad   :  { %78 = vsyncpa [#allocation6], 1 }

</bundles_post_ra>
